<compile_context>
chip_gen: v7x
topology: tpu7x:2x2x1
jax: 0.10.0
libtpu: 0.0.40
codegen_flags: <defaults>
</compile_context>

<pallas_src>
import math

import jax
import jax.numpy as jnp
from jax.experimental import pallas as pl
from jax.experimental.pallas import tpu as pltpu

# ---------------------------------------------------------------------------
# Small synthetic configuration (consistent with the module's forward).
# ---------------------------------------------------------------------------
D_MODEL = 32
NUM_HEADS = 4
HEAD_DIM = D_MODEL // NUM_HEADS
N_CLASSES = 2
HEIGHT = 4          # == height_max (pos-encoding view requires H*W == Hmax*Wmax)
WIDTH = 4           # == width_max
BATCH = 2
SEQ = 1 + HEIGHT * WIDTH

# Row layout of the packed small-constants array `w_tail` (lane width = D_MODEL).
ROW_MEXP = 0                        # rows [0, H)        : head->feature 0/1 expansion
ROW_VMCLS = NUM_HEADS               # rows [H, 2H)       : m_exp * v_cls
ROW_SCLS = 2 * NUM_HEADS            # row  2H, lanes[:H] : class-token self score
ROW_BCLS = 2 * NUM_HEADS + 1        # row  2H+1, [:C]    : fused classifier bias
ROW_WCLS = 16                       # rows [16, 16+D)    : fused out_proj @ classifier
TAIL_ROWS = ROW_WCLS + D_MODEL
assert ROW_WCLS >= ROW_BCLS + 1 and ROW_WCLS % 8 == 0


# ---------------------------------------------------------------------------
# Pallas kernel: single invocation (no grid), whole problem resident in VMEM.
# ---------------------------------------------------------------------------
def mha_classifier_kernel(x_ref, w_proj_ref, w_tail_ref, out_ref):
    B, C = out_ref.shape
    n_rows, d1 = x_ref.shape
    D = d1 - 1                       # last column of x is the folded-bias ones column
    H = NUM_HEADS
    HW = n_rows // B                 # 16 patch rows per batch element (tile aligned)

    # Packed small constants (static sub-tile loads of the single w_tail DMA).
    m_exp = w_tail_ref[ROW_MEXP:ROW_MEXP + H, :]            # (H, D) 0/1 head expansion
    vm_cls = w_tail_ref[ROW_VMCLS:ROW_VMCLS + H, :]         # (H, D) m_exp * v_cls
    s_cls = w_tail_ref[ROW_SCLS:ROW_SCLS + 1, 0:H]          # (1, H) class-token score
    bcls = w_tail_ref[ROW_BCLS:ROW_BCLS + 1, 0:C]           # (1, C)
    wcls = w_tail_ref[ROW_WCLS:ROW_WCLS + D, 0:C]           # (D, C) == wo @ wc

    # One batched projection matmul for the whole batch:
    #   proj[:, :D]   = value rows for every patch of every batch element
    #   proj[:, D:]   = pre-softmax per-head class-token attention scores
    proj = jnp.dot(x_ref[...], w_proj_ref[...], preferred_element_type=jnp.float32)

    ctx_rows = []
    for b in range(B):               # B tiny -> straight-line; 16-row slices are aligned
        r0 = b * HW
        v = proj[r0:r0 + HW, 0:D]                            # (HW, D)
        s = proj[r0:r0 + HW, D:D + H]                        # (HW, H)

        # Softmax over all S = HW + 1 keys; the constant class-token key is
        # folded in analytically via s_cls / vm_cls.
        m = jnp.maximum(jnp.max(s, axis=0, keepdims=True), s_cls)   # (1, H)
        e = jnp.exp(s - m)                                    # (HW, H)
        e_cls = jnp.exp(s_cls - m)                            # (1, H)
        inv = pl.reciprocal(jnp.sum(e, axis=0, keepdims=True) + e_cls, approx=True)

        # Class-token context: ctx[d] = sum_j p[j, head(d)] * v[j, d]
        p_full = jnp.dot(e * inv, m_exp, preferred_element_type=jnp.float32)  # (HW, D)
        ctx = (jnp.sum(p_full * v, axis=0, keepdims=True)
               + jnp.dot(e_cls * inv, vm_cls, preferred_element_type=jnp.float32))
        ctx_rows.append(ctx)

    # Stack the B class-token contexts and apply the fused out_proj+classifier
    # with one matmul and a single store.
    ctx_all = jnp.concatenate(ctx_rows, axis=0)               # (B, D)
    out_ref[...] = (jnp.dot(ctx_all, wcls, preferred_element_type=jnp.float32) + bcls)


@jax.jit
def mha_classifier(x_seq, params):
    """x_seq: (B, 1+H*W, D) sequence with the class token at position 0."""
    B, S, D = x_seq.shape
    HW = S - 1
    H, HD, C = NUM_HEADS, HEAD_DIM, N_CLASSES
    scale = 1.0 / math.sqrt(HD)

    # ---- exact constant folding in the wrapper (class token is the same for
    #      every batch element, as in the module: nn.Parameter expanded) ----
    cls_row = params["class_token"].reshape(1, D)            # class token row (no pos-enc)
    q0 = cls_row @ params["wq"] + params["bq"]               # (1, D) class-token query
    k_cls = cls_row @ params["wk"] + params["bk"]             # (1, D) class-token key
    v_cls = cls_row @ params["wv"] + params["bv"]             # (1, D) class-token value

    head_of_d = jnp.arange(D) // HD
    m_sum = (head_of_d[:, None] == jnp.arange(H)[None, :]).astype(jnp.float32)  # (D, H)
    m_exp = m_sum.T                                            # (H, D)

    # Fold query + scale into the key projection: scores = x_aug @ [w_s; b_s].
    w_qs = scale * q0.reshape(D, 1) * m_sum                    # (D, H)
    w_s = params["wk"] @ w_qs                                  # (D, H)
    b_s = params["bk"] @ w_qs                                  # (1, H)
    s_cls = k_cls @ w_qs                                       # (1, H)
    vm_cls = m_exp * v_cls                                     # (H, D)

    # Fold out_proj into the classifier (no nonlinearity in between).
    wcls = params["wo"] @ params["wc"]                         # (D, C)
    bcls = params["bo"] @ params["wc"] + params["bc"]          # (1, C)

    # Packed kernel inputs: 3 DMAs total.
    w_proj = jnp.concatenate(
        [jnp.concatenate([params["wv"], w_s], axis=1),         # (D, D+H)
         jnp.concatenate([params["bv"], b_s], axis=1)],        # (1, D+H) bias row
        axis=0)                                                # (D+1, D+H)

    w_tail = jnp.zeros((TAIL_ROWS, D), jnp.float32)
    w_tail = w_tail.at[ROW_MEXP:ROW_MEXP + H, :].set(m_exp)
    w_tail = w_tail.at[ROW_VMCLS:ROW_VMCLS + H, :].set(vm_cls)
    w_tail = w_tail.at[ROW_SCLS, 0:H].set(s_cls[0])
    w_tail = w_tail.at[ROW_BCLS, 0:C].set(bcls[0])
    w_tail = w_tail.at[ROW_WCLS:ROW_WCLS + D, 0:C].set(wcls)

    # Patch rows only (class-token row hoisted), flattened in the wrapper and
    # augmented with a ones column so the projection bias is a weight row.
    x_patches = x_seq[:, 1:, :].reshape(B * HW, D)
    x_aug = jnp.concatenate([x_patches, jnp.ones((B * HW, 1), jnp.float32)], axis=1)

    vmem = pl.BlockSpec(memory_space=pltpu.MemorySpace.VMEM)
    return pl.pallas_call(
        mha_classifier_kernel,
        out_shape=jax.ShapeDtypeStruct((B, C), jnp.float32),
        in_specs=[vmem, vmem, vmem],
        out_specs=vmem,
    )(x_aug, w_proj, w_tail)


# ---------------------------------------------------------------------------
# Glue: positional encoding (matches get_positional_encoding exactly).
# ---------------------------------------------------------------------------
def get_positional_encoding(height, width, d_model):
    y_pos = jnp.arange(height, dtype=jnp.float32)[:, None]        # (H, 1)
    x_pos = jnp.arange(width, dtype=jnp.float32)[:, None]         # (W, 1)
    div_term = jnp.exp(
        jnp.arange(0, d_model, 2, dtype=jnp.float32) * -(math.log(10000.0) / d_model))
    y_sin = jnp.sin(y_pos * div_term)[:, None, :]                 # (H, 1, D/2)
    y_cos = jnp.cos(y_pos * div_term)[:, None, :]
    x_sin = jnp.sin(x_pos * div_term)[None, :, :]                 # (1, W, D/2)
    x_cos = jnp.cos(x_pos * div_term)[None, :, :]
    sin_part = jnp.broadcast_to(y_sin + x_sin, (height, width, d_model // 2))
    cos_part = jnp.broadcast_to(y_cos + x_cos, (height, width, d_model // 2))
    # even indices <- sin part, odd indices <- cos part
    pe = jnp.stack([sin_part, cos_part], axis=-1).reshape(height, width, d_model)
    return pe


def prepare_sequence(x_nchw, class_token):
    B, D, Hh, Ww = x_nchw.shape
    x = jnp.transpose(x_nchw, (0, 2, 3, 1)).reshape(B, Hh * Ww, D)  # NCHW -> (B, HW, D)
    pe = get_positional_encoding(HEIGHT, WIDTH, D).reshape(Hh * Ww, D)
    x = x + pe[None, :, :]
    cls = jnp.broadcast_to(class_token, (B, 1, D))
    return jnp.concatenate([cls, x], axis=1)                      # (B, 1+HW, D)


# ---------------------------------------------------------------------------
# Pure-JAX reference (straightforward full attention) for verification.
# ---------------------------------------------------------------------------
def reference_forward(x_seq, params):
    B, S, D = x_seq.shape
    q = x_seq @ params["wq"] + params["bq"]
    k = x_seq @ params["wk"] + params["bk"]
    v = x_seq @ params["wv"] + params["bv"]

    def split(t):   # (B, S, D) -> (B, H, S, hd)
        return t.reshape(B, S, NUM_HEADS, HEAD_DIM).transpose(0, 2, 1, 3)

    qh, kh, vh = split(q), split(k), split(v)
    scores = jnp.einsum("bhqd,bhkd->bhqk", qh, kh) / math.sqrt(HEAD_DIM)
    probs = jax.nn.softmax(scores, axis=-1)
    attn = jnp.einsum("bhqk,bhkd->bhqd", probs, vh)
    attn = attn.transpose(0, 2, 1, 3).reshape(B, S, D)
    out = attn @ params["wo"] + params["bo"]
    cls = out[:, 0]
    return cls @ params["wc"] + params["bc"][0]


# ---------------------------------------------------------------------------
# Deterministic parameter init + run.
# ---------------------------------------------------------------------------
def init_params(key):
    keys = jax.random.split(key, 12)
    s = 0.05
    p = {
        "wq": s * jax.random.normal(keys[0], (D_MODEL, D_MODEL), jnp.float32),
        "bq": s * jax.random.normal(keys[1], (1, D_MODEL), jnp.float32),
        "wk": s * jax.random.normal(keys[2], (D_MODEL, D_MODEL), jnp.float32),
        "bk": s * jax.random.normal(keys[3], (1, D_MODEL), jnp.float32),
        "wv": s * jax.random.normal(keys[4], (D_MODEL, D_MODEL), jnp.float32),
        "bv": s * jax.random.normal(keys[5], (1, D_MODEL), jnp.float32),
        "wo": s * jax.random.normal(keys[6], (D_MODEL, D_MODEL), jnp.float32),
        "bo": s * jax.random.normal(keys[7], (1, D_MODEL), jnp.float32),
        "wc": s * jax.random.normal(keys[8], (D_MODEL, N_CLASSES), jnp.float32),
        "bc": s * jax.random.normal(keys[9], (1, N_CLASSES), jnp.float32),
        "class_token": jax.random.normal(keys[10], (1, 1, D_MODEL), jnp.float32),
    }
    return p


if __name__ == "__main__":
    key = jax.random.PRNGKey(0)
    pkey, xkey = jax.random.split(key)
    params = init_params(pkey)

    # Input like the PyTorch module: (batch, d_model, H, W)   [NCHW]
    x = jax.random.normal(xkey, (BATCH, D_MODEL, HEIGHT, WIDTH), jnp.float32)

    x_seq = prepare_sequence(x, params["class_token"])          # (B, S, D)
    logits = mha_classifier(x_seq, params)
    logits = jax.block_until_ready(logits)

    ref = reference_forward(x_seq, params)
    assert logits.shape == (BATCH, N_CLASSES)
    # 2e-3 tolerance covers the approximate-reciprocal softmax denominator and
    # default-precision MXU passes of the tiny in-kernel matmuls.
    assert jnp.allclose(logits, ref, atol=2e-3, rtol=2e-3), (logits, ref)

    print("KERNEL_OK")
</pallas_src>

<mosaic_0001>
module attributes {stable_mosaic.version = 11 : i64} {
  func.func @mha_classifier_kernel(%arg0: memref<32x33xf32, #tpu.memory_space<vmem>>, %arg1: memref<33x36xf32, #tpu.memory_space<vmem>>, %arg2: memref<48x32xf32, #tpu.memory_space<vmem>>, %arg3: memref<2x2xf32, #tpu.memory_space<vmem>>) attributes {dimension_semantics = [], scalar_prefetch = 0 : i64, scratch_operands = 0 : i64, tpu.core_type = #tpu.core_type<tc>} {
    %c0 = arith.constant 0 : index
    %c0_0 = arith.constant 0 : index
    %0 = vector.load %arg2[%c0, %c0_0] : memref<48x32xf32, #tpu.memory_space<vmem>>, vector<4x32xf32>
    %c4 = arith.constant 4 : index
    %c0_1 = arith.constant 0 : index
    %1 = vector.load %arg2[%c4, %c0_1] : memref<48x32xf32, #tpu.memory_space<vmem>>, vector<4x32xf32>
    %c8 = arith.constant 8 : index
    %c0_2 = arith.constant 0 : index
    %2 = vector.load %arg2[%c8, %c0_2] : memref<48x32xf32, #tpu.memory_space<vmem>>, vector<1x4xf32>
    %c9 = arith.constant 9 : index
    %c0_3 = arith.constant 0 : index
    %3 = vector.load %arg2[%c9, %c0_3] : memref<48x32xf32, #tpu.memory_space<vmem>>, vector<1x2xf32>
    %c16 = arith.constant 16 : index
    %c0_4 = arith.constant 0 : index
    %4 = vector.load %arg2[%c16, %c0_4] : memref<48x32xf32, #tpu.memory_space<vmem>>, vector<32x2xf32>
    %c0_5 = arith.constant 0 : index
    %c0_6 = arith.constant 0 : index
    %5 = vector.load %arg0[%c0_5, %c0_6] : memref<32x33xf32, #tpu.memory_space<vmem>>, vector<32x33xf32>
    %c0_7 = arith.constant 0 : index
    %c0_8 = arith.constant 0 : index
    %6 = vector.load %arg1[%c0_7, %c0_8] : memref<33x36xf32, #tpu.memory_space<vmem>>, vector<33x36xf32>
    %cst = arith.constant dense<0.000000e+00> : vector<32x36xf32>
    %7 = tpu.matmul %5, %6, %cst {dimension_numbers = #tpu.dot_dimension_numbers<[1], [0], [0], [1], [0, 0, 1, 1], [], []>} : vector<32x33xf32>, vector<33x36xf32>, vector<32x36xf32> -> vector<32x36xf32>
    %8 = vector.extract_strided_slice %7 {offsets = [0, 0], sizes = [16, 32], strides = [1, 1]} : vector<32x36xf32> to vector<16x32xf32>
    %9 = vector.extract_strided_slice %7 {offsets = [0, 32], sizes = [16, 4], strides = [1, 1]} : vector<32x36xf32> to vector<16x4xf32>
    %cst_9 = arith.constant dense<0xFF800000> : vector<4xf32>
    %10 = vector.multi_reduction <maximumf>, %9, %cst_9 [0] : vector<16x4xf32> to vector<4xf32>
    %11 = vector.shape_cast %10 : vector<4xf32> to vector<1x4xf32>
    %12 = arith.maximumf %11, %2 : vector<1x4xf32>
    %13 = vector.broadcast %12 : vector<1x4xf32> to vector<16x4xf32>
    %14 = arith.subf %9, %13 : vector<16x4xf32>
    %15 = math.exp %14 : vector<16x4xf32>
    %16 = arith.subf %2, %12 : vector<1x4xf32>
    %17 = math.exp %16 : vector<1x4xf32>
    %cst_10 = arith.constant dense<0.000000e+00> : vector<4xf32>
    %18 = vector.multi_reduction <add>, %15, %cst_10 [0] : vector<16x4xf32> to vector<4xf32>
    %19 = vector.shape_cast %18 : vector<4xf32> to vector<1x4xf32>
    %20 = arith.addf %19, %17 : vector<1x4xf32>
    %21 = tpu.reciprocal %20 {approx = true} : vector<1x4xf32> -> vector<1x4xf32>
    %22 = vector.broadcast %21 : vector<1x4xf32> to vector<16x4xf32>
    %23 = arith.mulf %15, %22 : vector<16x4xf32>
    %cst_11 = arith.constant dense<0.000000e+00> : vector<16x32xf32>
    %24 = tpu.matmul %23, %0, %cst_11 {dimension_numbers = #tpu.dot_dimension_numbers<[1], [0], [0], [1], [0, 0, 1, 1], [], []>} : vector<16x4xf32>, vector<4x32xf32>, vector<16x32xf32> -> vector<16x32xf32>
    %25 = arith.mulf %24, %8 : vector<16x32xf32>
    %cst_12 = arith.constant dense<0.000000e+00> : vector<32xf32>
    %26 = vector.multi_reduction <add>, %25, %cst_12 [0] : vector<16x32xf32> to vector<32xf32>
    %27 = vector.shape_cast %26 : vector<32xf32> to vector<1x32xf32>
    %28 = arith.mulf %17, %21 : vector<1x4xf32>
    %cst_13 = arith.constant dense<0.000000e+00> : vector<1x32xf32>
    %29 = tpu.matmul %28, %1, %cst_13 {dimension_numbers = #tpu.dot_dimension_numbers<[1], [0], [0], [1], [0, 0, 1, 1], [], []>} : vector<1x4xf32>, vector<4x32xf32>, vector<1x32xf32> -> vector<1x32xf32>
    %30 = arith.addf %27, %29 : vector<1x32xf32>
    %31 = vector.extract_strided_slice %7 {offsets = [16, 0], sizes = [16, 32], strides = [1, 1]} : vector<32x36xf32> to vector<16x32xf32>
    %32 = vector.extract_strided_slice %7 {offsets = [16, 32], sizes = [16, 4], strides = [1, 1]} : vector<32x36xf32> to vector<16x4xf32>
    %cst_14 = arith.constant dense<0xFF800000> : vector<4xf32>
    %33 = vector.multi_reduction <maximumf>, %32, %cst_14 [0] : vector<16x4xf32> to vector<4xf32>
    %34 = vector.shape_cast %33 : vector<4xf32> to vector<1x4xf32>
    %35 = arith.maximumf %34, %2 : vector<1x4xf32>
    %36 = vector.broadcast %35 : vector<1x4xf32> to vector<16x4xf32>
    %37 = arith.subf %32, %36 : vector<16x4xf32>
    %38 = math.exp %37 : vector<16x4xf32>
    %39 = arith.subf %2, %35 : vector<1x4xf32>
    %40 = math.exp %39 : vector<1x4xf32>
    %cst_15 = arith.constant dense<0.000000e+00> : vector<4xf32>
    %41 = vector.multi_reduction <add>, %38, %cst_15 [0] : vector<16x4xf32> to vector<4xf32>
    %42 = vector.shape_cast %41 : vector<4xf32> to vector<1x4xf32>
    %43 = arith.addf %42, %40 : vector<1x4xf32>
    %44 = tpu.reciprocal %43 {approx = true} : vector<1x4xf32> -> vector<1x4xf32>
    %45 = vector.broadcast %44 : vector<1x4xf32> to vector<16x4xf32>
    %46 = arith.mulf %38, %45 : vector<16x4xf32>
    %cst_16 = arith.constant dense<0.000000e+00> : vector<16x32xf32>
    %47 = tpu.matmul %46, %0, %cst_16 {dimension_numbers = #tpu.dot_dimension_numbers<[1], [0], [0], [1], [0, 0, 1, 1], [], []>} : vector<16x4xf32>, vector<4x32xf32>, vector<16x32xf32> -> vector<16x32xf32>
    %48 = arith.mulf %47, %31 : vector<16x32xf32>
    %cst_17 = arith.constant dense<0.000000e+00> : vector<32xf32>
    %49 = vector.multi_reduction <add>, %48, %cst_17 [0] : vector<16x32xf32> to vector<32xf32>
    %50 = vector.shape_cast %49 : vector<32xf32> to vector<1x32xf32>
    %51 = arith.mulf %40, %44 : vector<1x4xf32>
    %cst_18 = arith.constant dense<0.000000e+00> : vector<1x32xf32>
    %52 = tpu.matmul %51, %1, %cst_18 {dimension_numbers = #tpu.dot_dimension_numbers<[1], [0], [0], [1], [0, 0, 1, 1], [], []>} : vector<1x4xf32>, vector<4x32xf32>, vector<1x32xf32> -> vector<1x32xf32>
    %53 = arith.addf %50, %52 : vector<1x32xf32>
    %54 = tpu.concatenate %30, %53 in 0 : vector<1x32xf32>, vector<1x32xf32> -> vector<2x32xf32>
    %cst_19 = arith.constant dense<0.000000e+00> : vector<2x2xf32>
    %55 = tpu.matmul %54, %4, %cst_19 {dimension_numbers = #tpu.dot_dimension_numbers<[1], [0], [0], [1], [0, 0, 1, 1], [], []>} : vector<2x32xf32>, vector<32x2xf32>, vector<2x2xf32> -> vector<2x2xf32>
    %56 = vector.broadcast %3 : vector<1x2xf32> to vector<2x2xf32>
    %57 = arith.addf %55, %56 : vector<2x2xf32>
    %c0_20 = arith.constant 0 : index
    %c0_21 = arith.constant 0 : index
    %58 = vector.load %arg3[%c0_20, %c0_21] : memref<2x2xf32, #tpu.memory_space<vmem>>, vector<2x2xf32>
    tpu.vector_store %arg3[%c0_20, %c0_21], %57 {strides = array<i32>} : memref<2x2xf32, #tpu.memory_space<vmem>>, vector<2x2xf32>,
    return
  }
}

</mosaic_0001>

<bundles_post_ra>
// kernel: mha_classifier.1
= control target key start
LH: loop header
LB: loop body
LE: loop exit
PB: predicated region body
PF: predicated region fallthrough
CT: control target
= control target key end

     0   :  { %vm32_vm0 = vcmask 269312   ;;  %s1009_s0 = inlined_call_operand.vmem [shape: f32[32,33], index: 0, kind: input, shape index: {}]   ;;  %s1010_s1 = inlined_call_operand.vmem [shape: f32[33,36], index: 1, kind: input, shape index: {}]   ;;  %s1011_s2 = inlined_call_operand.vmem [shape: f32[48,32], index: 2, kind: input, shape index: {}]   ;;  %s1012_s3 = inlined_call_operand.hbm [shape: f32[2,2], index: 3, kind: output, shape index: {}]  }
   0x1   :  { %v27_v0 = vld [vmem:[%s1010_s1] sm:$0xff]  ;;  %v28_v1 = vld [vmem:[%s1010_s1 + $0x8] sm:$0xff]  ;;  %v29_v2 = vld [vmem:[%s1010_s1 + $0x10] sm:$0xff] }
   0x2   :  { %v779_v3 = vpack.c.bf16 %v28_v1, %v27_v0  ;;  %v30_v4 = vld [vmem:[%s1010_s1 + $0x18] sm:$0xff]  ;;  %v23_v5 = vld [vmem:[%s1009_s0] sm:$0xff]  ;;  %v884_v7 = vld [vmem:[%s1011_s2 + $0x8] sm:$0x1] }
   0x3   :  { %v783_v6 = vpack.c.bf16 %v30_v4, %v29_v2  ;;  %742 = vmatprep.mubr.msk.f32.mxu0 %vm32_vm0, %v23_v5 }
   0x4   :  { %780 = vmatprep.subr.bf16.mxu0 %v779_v3 }
   0x5   :  { %8 = vsyncpa [#allocation3], 0  ;;  %782 = vmatpush3.bf16.msra.mxu0 %v779_v3  ;;  %s839_s24 = smov 32   ;;  %v31_v8 = vld [vmem:[%s1010_s1 + $0x20] sm:$0x1]  ;;  %vm45_vm1 = vcmask 1040384   ;;  %v149_v24 = vlaneseq }
   0x6   :  { %145 = vrot.lane.b32.xlu0 %v884_v7, %s839_s24  ;;  %784 = vmatprep.subr.bf16.mxu0 %v783_v6  ;;  %v24_v9 = vld [vmem:[%s1009_s0 + $0x8] sm:$0xff]  ;;  %v25_v10 = vld [vmem:[%s1009_s0 + $0x10] sm:$0xff]  ;;  %v26_v11 = vld [vmem:[%s1009_s0 + $0x18] sm:$0xff]  ;;  %vm134_vm2 = vcmask 294144   ;;  %s840_s0 = smov 96   ;;  %vm198_vm3 = vcmask 1043456  }
   0x7   :  { %v150_v29 = vshrl.u32 %v149_v24, 7  ;;  %vm842_vm4 = vmmov 0   ;;  %vm193_vm5 = vcmask 31744   ;;  %vm279_vm6 = vcmask 261120   ;;  %s844_s19 = smov [#allocation2]  }
   0x8   :  { %s683_s20 = sshll.u32 %s844_s19, 4  ;;  %vm675_vm7 = vcmask 9216   ;;  %s684_s20 = int_to_ptr.vmem [resolvable:$true] %s683_s20 }
   0x9   :  { %786 = vmatpush3.bf16.msra.mxu0 %v783_v6  ;;  %v921_v34 = vsub.s32 0, %v150_v29  ;;  %s815_s21 = scalar_lea.vmem %s684_s20, 32  ;;  %p820_p1 = scmp.lt.s32.totalorder %s684_s20, %s684_s20 }
   0xa   :  { %740 = vmatprep.subr.msk.mxu0 %vm45_vm1, %v31_v8  ;;  %p816_p0 = scmp.ne.s32.totalorder %s684_s20, %s815_s21  ;;  %p821_p2 = scmp.lt.s32.totalorder %s815_s21, %s815_s21 }
   0xc   :  { %p822_p3 = por %p821_p2, %p820_p1 }
   0xd   :  { %741 = vmatpush3.msk.msra.mxu0 %vm45_vm1, %v31_v8 }
   0xe   :  { %743 = vmatmul.mubr.msk.f32.vlgmr.msra.gmra.mrb[0].mxu0 %vm32_vm0, %v24_v9  ;;  %p823_p4 = pnand %p822_p3, %p816_p0 }
   0xf   :  { %745 = vmatprep.mubr.msk.f32.mxu0 %vm32_vm0, %v25_v10 }
  0x12   :  { %746 = vmatmul.mubr.msk.f32.gmra.mrb[2].mxu0 %vm32_vm0, %v26_v11 }
  0x78   :  { %v146_v32 = vpop.permute.xlu0 %145 }
  0xe1   :  { %v905_v12 = vpop.f32.mrb[0].mxu0 }
  0xe2   :  { %v136_v13 = vsel %vm134_vm2, %v905_v12, -inf  ;;  %v909_v14 = vpop.f32.mrb[1].mxu0 }
  0xe3   :  { %v135_v15 = vsel %vm134_vm2, %v909_v14, -inf }
  0xe4   :  { %v137_v16 = vmax.f32 %v135_v15, %v136_v13 }
  0xe5   :  { %v913_v17 = vpop.f32.mrb[2].mxu0 }
  0xe6   :  { %v138_v18 = vrot.slane %v137_v16, 4  ;;  %v372_v19 = vsel %vm134_vm2, %v913_v17, -inf  ;;  %v917_v20 = vpop.f32.mrb[3].mxu0 }
  0xe7   :  { %v371_v21 = vsel %vm134_vm2, %v917_v20, -inf }
  0xe8   :  { %v139_v22 = vmax.f32 %v137_v16, %v138_v18  ;;  %v373_v23 = vmax.f32 %v371_v21, %v372_v19 }
  0xea   :  { %v374_v25 = vrot.slane %v373_v23, 4  ;;  %v140_v26 = vrot.slane %v139_v22, 2 }
  0xec   :  { %v375_v27 = vmax.f32 %v373_v23, %v374_v25  ;;  %v141_v28 = vmax.f32 %v139_v22, %v140_v26  ;;  %v15_v23 = vld [vmem:[%s1011_s2] sm:$0xf]  ;;  %v841_v25 = vmov 0.0  }
  0xed   :  { %748 = vmatprep.subr.msk.mxu1 %vm198_vm3, %v15_v23  ;;  %776 = vmatprep.mubr.msk.f32.mxu0 %vm842_vm4, %v841_v25 }
  0xee   :  { %v142_v30 = vrot.slane %v141_v28, 1  ;;  %v376_v31 = vrot.slane %v375_v27, 2  ;;  %749 = vmatpush3.msk.msra.mxu1 %vm198_vm3, %v15_v23 }
  0xef   :  { %753 = vmatprep.subr.mxu1 %v841_v25 }
  0xf0   :  { %v143_v33 = vmax.f32 %v141_v28, %v142_v30  ;;  %v377_v35 = vmax.f32 %v375_v27, %v376_v31 }
  0xf2   :  { %v148_v36 = vmax.f32 %v143_v33, %v146_v32  ;;  %v378_v37 = vrot.slane %v377_v35, 1 }
  0xf4   :  { %v152_v38 = vrot.slane %v148_v36, %v921_v34  ;;  %160 = vrot.lane.b32.xlu0 %v148_v36, %s840_s0  ;;  %v379_v39 = vmax.f32 %v377_v35, %v378_v37  ;;  %v16_v37 = vld [vmem:[%s1011_s2 + $0x4] sm:$0xf] }
  0xf6   :  { %v153_v40 = vsub.f32 %v909_v14, %v152_v38  ;;  %v154_v41 = vsub.f32 %v905_v12, %v152_v38  ;;  %v380_v42 = vmax.f32 %v379_v39, %v146_v32 }
  0xf8   :  { %v155_v43 = vmul.f32 1.442695, %v153_v40  ;;  %v157_v44 = vmul.f32 1.442695, %v154_v41  ;;  %392 = vrot.lane.b32.xlu1 %v380_v42, %s840_s0  ;;  %v384_v45 = vrot.slane %v380_v42, %v921_v34 }
  0xfa   :  { %799 = vpow2.f32 %v155_v43  ;;  %v385_v46 = vsub.f32 %v917_v20, %v384_v45  ;;  %v386_v47 = vsub.f32 %v913_v17, %v384_v45  ;;  %v19_v43 = vld [vmem:[%s1011_s2 + $0x10] sm:$0xff] }
  0xfb   :  { %801 = vpow2.f32 %v157_v44  ;;  %v20_v44 = vld [vmem:[%s1011_s2 + $0x18] sm:$0xff] }
  0xfc   :  { %v387_v48 = vmul.f32 1.442695, %v385_v46  ;;  %v389_v49 = vmul.f32 1.442695, %v386_v47  ;;  %v788_v45 = vpack.c.bf16 %v20_v44, %v19_v43  ;;  %v843_v46 = vmov 0.0|0.0   ;;  %v21_v47 = vld [vmem:[%s1011_s2 + $0x20] sm:$0xff] }
  0xfd   :  { %787 = vmatprep.subr.bf16.mxu0 %v843_v46 }
  0xfe   :  { %803 = vpow2.f32 %v387_v48  ;;  %789 = vmatpush3.bf16.msra.mxu0 %v788_v45  ;;  %v22_v48 = vld [vmem:[%s1011_s2 + $0x28] sm:$0xff] }
  0xff   :  { %805 = vpow2.f32 %v389_v49  ;;  %790 = vmatprep.subr.bf16.mxu0 %v843_v46  ;;  %v791_v49 = vpack.c.bf16 %v22_v48, %v21_v47 }
 0x102   :  { %792 = vmatpush3.bf16.msra.mxu0 %v791_v49 }
 0x104   :  { %v800_v50 = vpop.eup %799 }
 0x105   :  { %v802_v51 = vpop.eup %801  ;;  %v166_v52 = vsel %vm134_vm2, %v800_v50, 0.0 }
 0x106   :  { %v167_v53 = vsel %vm134_vm2, %v802_v51, 0.0 }
 0x107   :  { %v168_v54 = vadd.f32 %v167_v53, %v166_v52 }
 0x108   :  { %v804_v55 = vpop.eup %803 }
 0x109   :  { %v806_v56 = vpop.eup %805  ;;  %v398_v57 = vsel %vm134_vm2, %v804_v55, 0.0  ;;  %v169_v4 = vrot.slane %v168_v54, 4 }
 0x10a   :  { %v399_v58 = vsel %vm134_vm2, %v806_v56, 0.0 }
 0x10b   :  { %v400_v59 = vadd.f32 %v399_v58, %v398_v57  ;;  %v170_v5 = vadd.f32 %v169_v4, %v168_v54 }
 0x10d   :  { %v401_v6 = vrot.slane %v400_v59, 4  ;;  %v171_v8 = vrot.slane %v170_v5, 2 }
 0x10f   :  { %v402_v9 = vadd.f32 %v401_v6, %v400_v59  ;;  %v172_v10 = vadd.f32 %v171_v8, %v170_v5 }
 0x111   :  { %v403_v11 = vrot.slane %v402_v9, 2  ;;  %v173_v13 = vrot.slane %v172_v10, 1 }
 0x113   :  { %v404_v15 = vadd.f32 %v403_v11, %v402_v9 }
 0x115   :  { %v405_v16 = vrot.slane %v404_v15, 1 }
 0x117   :  { %v406_v21 = vadd.f32 %v405_v16, %v404_v15 }
 0x166   :  { %v161_v60 = vpop.permute.xlu0 %160 }
 0x167   :  { %v163_v61 = vsub.f32 %v884_v7, %v161_v60 }
 0x169   :  { %v164_v62 = vmul.f32 1.442695, %v163_v61 }
 0x16a   :  { %v393_v63 = vpop.permute.xlu1 %392 }
 0x16b   :  { %807 = vpow2.f32 %v164_v62  ;;  %v395_v0 = vsub.f32 %v884_v7, %v393_v63  ;;  %v174_v7 = vadd.f32 %v173_v13, %v172_v10 }
 0x16d   :  { %v396_v1 = vmul.f32 1.442695, %v395_v0 }
 0x16f   :  { %809 = vpow2.f32 %v396_v1 }
 0x175   :  { %v808_v2 = vpop.eup %807 }
 0x176   :  { %176 = vrot.lane.b32.xlu1 %v808_v2, %s839_s24 }
 0x179   :  { %v938_v3 = vpop.eup %809 }
 0x17a   :  { %408 = vrot.lane.b32.xlu0 %v938_v3, %s839_s24 }
 0x1e8   :  { %v177_v18 = vpop.permute.xlu1 %176 }
 0x1e9   :  { %v179_v19 = vadd.f32 %v177_v18, %v174_v7 }
 0x1eb   :  { %811 = vrcp.f32 %v179_v19  ;;  %v706_v19 = vld [vmem:[%s1011_s2 + $0x9] ss:$0 sm:$0xff] }
 0x1ec   :  { %v409_v22 = vpop.permute.xlu0 %408 }
 0x1ed   :  { %v411_v24 = vadd.f32 %v409_v22, %v406_v21 }
 0x1ef   :  { %813 = vrcp.f32 %v411_v24 }
 0x1f5   :  { %v812_v26 = vpop.eup %811 }
 0x1f6   :  { %v184_v27 = vrot.slane %v812_v26, %v921_v34 }
 0x1f8   :  { %v186_v28 = vmul.f32 %v802_v51, %v184_v27  ;;  %v185_v29 = vmul.f32 %v800_v50, %v184_v27 }
 0x1f9   :  { %v814_v30 = vpop.eup %813 }
 0x1fa   :  { %191 = vrot.lane.b32.xlu0 %v186_v28, %s840_s0  ;;  %189 = vrot.lane.b32.xlu1 %v185_v29, %s840_s0  ;;  %v416_v31 = vrot.slane %v814_v30, %v921_v34 }
 0x1fc   :  { %v417_v32 = vmul.f32 %v804_v55, %v416_v31  ;;  %v418_v33 = vmul.f32 %v806_v56, %v416_v31 }
 0x1fe   :  { %421 = vrot.lane.b32.xlu0 %v417_v32, %s840_s0  ;;  %290 = vrot.lane.b32.xlu1 %v812_v26, %s840_s0 }
 0x202   :  { %516 = vrot.lane.b32.xlu0 %v814_v30, %s840_s0  ;;  %423 = vrot.lane.b32.xlu1 %v418_v33, %s840_s0 }
 0x26c   :  { %v192_v35 = vpop.permute.xlu0 %191  ;;  %v190_v36 = vpop.permute.xlu1 %189 }
 0x26d   :  { %750 = vmatprep.mubr.msk.f32.mxu1 %vm193_vm5, %v190_v36 }
 0x26e   :  { %751 = vmatmul.mubr.msk.f32.vlgmr.msra.gmra.mrb[0].mxu1 %vm193_vm5, %v192_v35 }
 0x26f   :  { %754 = vmatpush3.msk.msra.mxu1 %vm198_vm3, %v16_v37  ;;  %755 = vmatprep.mubr.msk.f32.mxu1 %vm842_vm4, %v841_v25 }
 0x270   :  { %v422_v34 = vpop.permute.xlu0 %421  ;;  %v291_v38 = vpop.permute.xlu1 %290  ;;  %758 = vmatprep.subr.msk.mxu1 %vm198_vm3, %v15_v23 }
 0x271   :  { %v293_v39 = vmul.f32 %v808_v2, %v291_v38 }
 0x273   :  { %756 = vmatmul.mubr.msk.f32.vlgmr.msra.gmra.mrb[2].mxu1 %vm193_vm5, %v293_v39 }
 0x274   :  { %759 = vmatpush3.msk.msra.mxu1 %vm198_vm3, %v15_v23  ;;  %760 = vmatprep.mubr.msk.f32.mxu1 %vm193_vm5, %v422_v34  ;;  %v517_v40 = vpop.permute.xlu0 %516  ;;  %v424_v41 = vpop.permute.xlu1 %423 }
 0x275   :  { %763 = vmatprep.subr.mxu1 %v841_v25  ;;  %v519_v42 = vmul.f32 %v938_v3, %v517_v40 }
 0x277   :  { %761 = vmatmul.mubr.msk.f32.vlgmr.msra.gmra.mrb[4].mxu1 %vm193_vm5, %v424_v41 }
 0x278   :  { %764 = vmatpush3.msk.msra.mxu1 %vm198_vm3, %v16_v37  ;;  %765 = vmatprep.mubr.msk.f32.mxu1 %vm842_vm4, %v841_v25 }
 0x27b   :  { %766 = vmatmul.mubr.msk.f32.vlgmr.msra.gmra.mrb[6].mxu1 %vm193_vm5, %v519_v42 }
 0x341   :  { %v752_v50 = vpop.f32.mrb[0].mxu1 }
 0x342   :  { %v278_v51 = vmul.f32 %v752_v50, %v905_v12  ;;  %v268_v52 = vpop.f32.mrb[1].mxu1 }
 0x343   :  { %v277_v53 = vmul.f32 %v268_v52, %v909_v14 }
 0x344   :  { %v281_v54 = vsel %vm279_vm6, %v278_v51, 0.0 }
 0x345   :  { %v280_v55 = vsel %vm279_vm6, %v277_v53, 0.0 }
 0x346   :  { %v282_v56 = vadd.f32 %v281_v54, %v280_v55  ;;  %v366_v57 = vpop.f32.mrb[2].mxu1 }
 0x347   :  { %v757_v58 = vpop.f32.mrb[3].mxu1 }
 0x348   :  { %v283_v59 = vrot.slane %v282_v56, 4 }
 0x34a   :  { %v284_v60 = vadd.f32 %v283_v59, %v282_v56  ;;  %v762_v61 = vpop.f32.mrb[4].mxu1 }
 0x34b   :  { %v505_v62 = vmul.f32 %v762_v61, %v913_v17  ;;  %v495_v63 = vpop.f32.mrb[5].mxu1 }
 0x34c   :  { %v285_v0 = vrot.slane %v284_v60, 2  ;;  %v504_v1 = vmul.f32 %v495_v63, %v917_v20 }
 0x34d   :  { %v507_v12 = vsel %vm279_vm6, %v505_v62, 0.0 }
 0x34e   :  { %v286_v2 = vadd.f32 %v285_v0, %v284_v60  ;;  %v506_v14 = vsel %vm279_vm6, %v504_v1, 0.0  ;;  %v589_v3 = vpop.f32.mrb[6].mxu1 }
 0x34f   :  { %v508_v4 = vadd.f32 %v507_v12, %v506_v14  ;;  %v767_v5 = vpop.f32.mrb[7].mxu1 }
 0x350   :  { %v287_v6 = vrot.slane %v286_v2, 1 }
 0x351   :  { %v509_v8 = vrot.slane %v508_v4, 4 }
 0x352   :  { %v288_v9 = vadd.f32 %v287_v6, %v286_v2 }
 0x353   :  { %v510_v10 = vadd.f32 %v509_v8, %v508_v4 }
 0x354   :  { %v370_v11 = vadd.f32 %v366_v57, %v288_v9 }
 0x355   :  { %v511_v13 = vrot.slane %v510_v10, 2 }
 0x357   :  { %v512_v15 = vadd.f32 %v511_v13, %v510_v10 }
 0x359   :  { %v513_v17 = vrot.slane %v512_v15, 1 }
 0x35b   :  { %v514_v7 = vadd.f32 %v513_v17, %v512_v15 }
 0x35d   :  { %v593_v16 = vadd.f32 %v589_v3, %v514_v7 }
 0x35f   :  { %v595_v18 = vrot.slane %v593_v16, 7 }
 0x361   :  { %v597_v20 = vsel %vm45_vm1, %v370_v11, %v595_v18 }
 0x362   :  { %777 = vmatmul.mubr.msk.f32.vlgmr.msra.gmra.mrb[4].mxu0 %vm279_vm6, %v597_v20 }
 0x435   :  { %v671_v21 = vpop.f32.mrb[4].mxu0 }
 0x436   :  { %v672_v22 = vadd.f32 %v706_v19, %v671_v21  ;;  %v778_v23 = vpop.f32.mrb[5].mxu0 }
 0x438   :  { %676 = vst.msk [vmem:[#allocation2] sm:$0x3] %vm675_vm7, %v672_v22 }
 0x439   :  { %826 = shalt.err (!%p823_p4)
}
 0x43a   :  { %s827_s24 = scalar_lea.hbm %s1012_s3, 32 }
 0x43b   :  { %p828_p5 = scmp.ne.s32.totalorder %s1012_s3, %s827_s24  ;;  %p831_p6 = scmp.lt.u32.totalorder %s827_s24, %s1012_s3 }
 0x43d   :  { %p833_p7 = pnand %p831_p6, %p828_p5 }
 0x43f   :  { %836 = shalt.err (!%p833_p7)
}
 0x440   :  { %686 = dma.vmem_to_hbm [thread:$0]  %s684_s20, 32, %s1012_s3, [#allocation3]  }
 0x441   :  { %837 = dma.done.wait [#allocation3], 32  }
 0x442   :  { %838 = vsyncadd [#allocation3], 4294967264 }
 0x443   :  { %690 = vsyncpa [#allocation3], 1 }

</bundles_post_ra>
